<compile_context>
chip_gen: v6e
topology: v6e:2x2x1
jax: 0.10.0
libtpu: 0.0.40
codegen_flags: <defaults>
</compile_context>

<pallas_src>
import jax
import jax.numpy as jnp
from jax.experimental import pallas as pl
from jax.experimental.pallas import tpu as pltpu


def _round_up(x: int, m: int) -> int:
    return ((x + m - 1) // m) * m


def _mlp_kernel(s_ref, a_ref, w1s_ref, w1a_ref, b1_ref,
                w2_ref, b2_ref, w3_ref, b3_ref, o_ref):
    # Layer 1: the torch.cat is fused into two MXU dots on the split w1.
    h1 = jnp.dot(s_ref[...], w1s_ref[...], preferred_element_type=jnp.float32)
    h1 = h1 + jnp.dot(a_ref[...], w1a_ref[...], preferred_element_type=jnp.float32)
    h1 = jnp.maximum(h1 + b1_ref[...], 0.0)

    # Layer 2.
    h2 = jnp.dot(h1, w2_ref[...], preferred_element_type=jnp.float32) + b2_ref[...]
    h2 = jnp.maximum(h2, 0.0)

    # Layer 3 (atom logits, lane-padded width -> unmasked vst).
    out = jnp.dot(h2, w3_ref[...], preferred_element_type=jnp.float32) + b3_ref[...]
    o_ref[...] = out.astype(o_ref.dtype)


def value_network_forward(state, action, params, *, block_batch=256):
    """Pallas equivalent of ValueNetwork.forward(state, action) -> (B, num_atoms)."""
    w1s, w1a, b1 = params["w1_s"], params["w1_a"], params["b1"]
    w2, b2 = params["w2"], params["b2"]
    w3, b3 = params["w3"], params["b3"]          # atom dim pre-padded to 128-multiple
    num_atoms = params["num_atoms"]              # true (unpadded) atom count

    state = state.astype(jnp.float32)
    action = action.astype(jnp.float32)

    B, S = state.shape
    A = action.shape[1]
    H = w1s.shape[1]
    N_pad = w3.shape[1]

    # Batch tile: multiple of 8 (sublane), capped so double-buffered activation
    # tiles stay far under the v7x 64 MiB / 32 MiB-scoped VMEM budget.
    bm = min(_round_up(B, 8), block_batch)
    B_pad = _round_up(B, bm)
    if B_pad != B:
        pad = B_pad - B
        state = jnp.pad(state, ((0, pad), (0, 0)))
        action = jnp.pad(action, ((0, pad), (0, 0)))

    grid = (B_pad // bm,)

    # Weights/biases: same block for every grid step -> fetched once, VMEM-resident.
    resident = lambda shape: pl.BlockSpec(shape, lambda i: (0,) * len(shape))

    flops = 2 * B_pad * (S * H + A * H + H * H + H * N_pad)
    bytes_accessed = 4 * (B_pad * (S + A + N_pad)
                          + S * H + A * H + H * H + H * N_pad + 2 * H + N_pad)

    out = pl.pallas_call(
        _mlp_kernel,
        out_shape=jax.ShapeDtypeStruct((B_pad, N_pad), jnp.float32),
        grid=grid,
        in_specs=[
            pl.BlockSpec((bm, S), lambda i: (i, 0)),   # state tile
            pl.BlockSpec((bm, A), lambda i: (i, 0)),   # action tile
            resident(w1s.shape), resident(w1a.shape), resident(b1.shape),
            resident(w2.shape), resident(b2.shape),
            resident(w3.shape), resident(b3.shape),
        ],
        out_specs=pl.BlockSpec((bm, N_pad), lambda i: (i, 0)),
        compiler_params=pltpu.CompilerParams(
            dimension_semantics=("parallel",)),        # shards batch grid on v7x's 2 TCs
        cost_estimate=pl.CostEstimate(
            flops=flops, transcendentals=0, bytes_accessed=bytes_accessed),
    )(state, action, w1s, w1a, b1, w2, b2, w3, b3)

    # Strip batch padding and the lane padding of the atom axis.
    return out[:B, :num_atoms]


def init_params(key, state_dim, action_dim, hidden_size, num_atoms, *, lane=128):
    """PyTorch-Linear-style uniform init, stored in kernel-friendly layout:
       w1 split along the input axis (state vs action), atom dim zero-padded to
       a multiple of 128 lanes."""
    def linear_init(k, fan_in, fan_out):
        kw, kb = jax.random.split(k)
        bound = 1.0 / jnp.sqrt(jnp.float32(fan_in))
        w = jax.random.uniform(kw, (fan_in, fan_out), jnp.float32, -bound, bound)
        b = jax.random.uniform(kb, (1, fan_out), jnp.float32, -bound, bound)
        return w, b

    k1, k2, k3 = jax.random.split(key, 3)
    in_dim = state_dim + action_dim
    w1, b1 = linear_init(k1, in_dim, hidden_size)
    w2, b2 = linear_init(k2, hidden_size, hidden_size)
    w3, b3 = linear_init(k3, hidden_size, num_atoms)

    # Split w1 so the kernel can fuse cat([state, action]) into two dots.
    w1_s, w1_a = w1[:state_dim], w1[state_dim:]

    # Lane-pad the atom dimension (51 -> 128) with zero columns.
    n_pad = _round_up(num_atoms, lane)
    w3_p = jnp.zeros((hidden_size, n_pad), jnp.float32).at[:, :num_atoms].set(w3)
    b3_p = jnp.zeros((1, n_pad), jnp.float32).at[:, :num_atoms].set(b3)

    return {"w1_s": w1_s, "w1_a": w1_a, "b1": b1,
            "w2": w2, "b2": b2,
            "w3": w3_p, "b3": b3_p,
            "num_atoms": num_atoms}


def _reference_forward(state, action, p):
    """Plain-JAX reference of the same math (reconstructs the unsplit/unpadded weights)."""
    w1 = jnp.concatenate([p["w1_s"], p["w1_a"]], axis=0)
    x = jnp.concatenate([state, action], axis=1)
    x = jnp.maximum(x @ w1 + p["b1"], 0.0)
    x = jnp.maximum(x @ p["w2"] + p["b2"], 0.0)
    return (x @ p["w3"] + p["b3"])[:, : p["num_atoms"]]


if __name__ == "__main__":
    # Shapes consistent with the module: state_shape=(17,), action_shape=(6,),
    # hidden_size=32, num_atoms=51 (C51-style), batch=8.
    STATE_DIM, ACTION_DIM, HIDDEN, NUM_ATOMS, BATCH = 17, 6, 32, 51, 8
    V_MIN, V_MAX = -10.0, 10.0
    # z_atoms = jnp.linspace(V_MIN, V_MAX, NUM_ATOMS)  # buffer only; unused in forward

    key = jax.random.PRNGKey(0)
    k_s, k_a, k_p = jax.random.split(key, 3)
    state = jax.random.normal(k_s, (BATCH, STATE_DIM), jnp.float32)
    action = jax.random.normal(k_a, (BATCH, ACTION_DIM), jnp.float32)
    params = init_params(k_p, STATE_DIM, ACTION_DIM, HIDDEN, NUM_ATOMS)

    out = jax.block_until_ready(value_network_forward(state, action, params))

    ref = _reference_forward(state, action, params)
    assert out.shape == (BATCH, NUM_ATOMS)
    assert jnp.allclose(out, ref, atol=1e-4, rtol=1e-4)

    print("KERNEL_OK")
</pallas_src>

<mosaic_0001>
module attributes {stable_mosaic.version = 11 : i64} {
  func.func @_mlp_kernel(%arg0: i32, %arg1: memref<8x17xf32, #tpu.memory_space<vmem>>, %arg2: memref<8x6xf32, #tpu.memory_space<vmem>>, %arg3: memref<17x32xf32, #tpu.memory_space<vmem>>, %arg4: memref<6x32xf32, #tpu.memory_space<vmem>>, %arg5: memref<1x32xf32, #tpu.memory_space<vmem>>, %arg6: memref<32x32xf32, #tpu.memory_space<vmem>>, %arg7: memref<1x32xf32, #tpu.memory_space<vmem>>, %arg8: memref<32x128xf32, #tpu.memory_space<vmem>>, %arg9: memref<1x128xf32, #tpu.memory_space<vmem>>, %arg10: memref<8x128xf32, #tpu.memory_space<vmem>>) attributes {dimension_semantics = [#tpu.dimension_semantics<parallel>], iteration_bounds = array<i64: 1>, scalar_prefetch = 0 : i64, scratch_operands = 0 : i64, tpu.core_type = #tpu.core_type<tc>, window_params = [{transform_indices = @transform_0, window_bounds = array<i64: 8, 17>}, {transform_indices = @transform_1, window_bounds = array<i64: 8, 6>}, {pipeline_mode = #tpu.pipeline_mode<synchronous>, transform_indices = @transform_2, window_bounds = array<i64: 17, 32>}, {pipeline_mode = #tpu.pipeline_mode<synchronous>, transform_indices = @transform_3, window_bounds = array<i64: 6, 32>}, {pipeline_mode = #tpu.pipeline_mode<synchronous>, transform_indices = @transform_4, window_bounds = array<i64: 1, 32>}, {pipeline_mode = #tpu.pipeline_mode<synchronous>, transform_indices = @transform_5, window_bounds = array<i64: 32, 32>}, {pipeline_mode = #tpu.pipeline_mode<synchronous>, transform_indices = @transform_6, window_bounds = array<i64: 1, 32>}, {pipeline_mode = #tpu.pipeline_mode<synchronous>, transform_indices = @transform_7, window_bounds = array<i64: 32, 128>}, {pipeline_mode = #tpu.pipeline_mode<synchronous>, transform_indices = @transform_8, window_bounds = array<i64: 1, 128>}, {transform_indices = @transform_9, window_bounds = array<i64: 8, 128>}]} {
    %c0 = arith.constant 0 : index
    %c0_0 = arith.constant 0 : index
    %0 = vector.load %arg1[%c0, %c0_0] : memref<8x17xf32, #tpu.memory_space<vmem>>, vector<8x17xf32>
    %c0_1 = arith.constant 0 : index
    %c0_2 = arith.constant 0 : index
    %1 = vector.load %arg3[%c0_1, %c0_2] : memref<17x32xf32, #tpu.memory_space<vmem>>, vector<17x32xf32>
    %cst = arith.constant dense<0.000000e+00> : vector<8x32xf32>
    %2 = tpu.matmul %0, %1, %cst {dimension_numbers = #tpu.dot_dimension_numbers<[1], [0], [0], [1], [0, 0, 1, 1], [], []>} : vector<8x17xf32>, vector<17x32xf32>, vector<8x32xf32> -> vector<8x32xf32>
    %c0_3 = arith.constant 0 : index
    %c0_4 = arith.constant 0 : index
    %3 = vector.load %arg2[%c0_3, %c0_4] : memref<8x6xf32, #tpu.memory_space<vmem>>, vector<8x6xf32>
    %c0_5 = arith.constant 0 : index
    %c0_6 = arith.constant 0 : index
    %4 = vector.load %arg4[%c0_5, %c0_6] : memref<6x32xf32, #tpu.memory_space<vmem>>, vector<6x32xf32>
    %cst_7 = arith.constant dense<0.000000e+00> : vector<8x32xf32>
    %5 = tpu.matmul %3, %4, %cst_7 {dimension_numbers = #tpu.dot_dimension_numbers<[1], [0], [0], [1], [0, 0, 1, 1], [], []>} : vector<8x6xf32>, vector<6x32xf32>, vector<8x32xf32> -> vector<8x32xf32>
    %6 = arith.addf %2, %5 : vector<8x32xf32>
    %c0_8 = arith.constant 0 : index
    %c0_9 = arith.constant 0 : index
    %7 = vector.load %arg5[%c0_8, %c0_9] : memref<1x32xf32, #tpu.memory_space<vmem>>, vector<1x32xf32>
    %8 = vector.broadcast %7 : vector<1x32xf32> to vector<8x32xf32>
    %9 = arith.addf %6, %8 : vector<8x32xf32>
    %cst_10 = arith.constant 0.000000e+00 : f32
    %10 = vector.broadcast %cst_10 : f32 to vector<8x32xf32>
    %11 = arith.maximumf %9, %10 : vector<8x32xf32>
    %c0_11 = arith.constant 0 : index
    %c0_12 = arith.constant 0 : index
    %12 = vector.load %arg6[%c0_11, %c0_12] : memref<32x32xf32, #tpu.memory_space<vmem>>, vector<32x32xf32>
    %cst_13 = arith.constant dense<0.000000e+00> : vector<8x32xf32>
    %13 = tpu.matmul %11, %12, %cst_13 {dimension_numbers = #tpu.dot_dimension_numbers<[1], [0], [0], [1], [0, 0, 1, 1], [], []>} : vector<8x32xf32>, vector<32x32xf32>, vector<8x32xf32> -> vector<8x32xf32>
    %c0_14 = arith.constant 0 : index
    %c0_15 = arith.constant 0 : index
    %14 = vector.load %arg7[%c0_14, %c0_15] : memref<1x32xf32, #tpu.memory_space<vmem>>, vector<1x32xf32>
    %15 = vector.broadcast %14 : vector<1x32xf32> to vector<8x32xf32>
    %16 = arith.addf %13, %15 : vector<8x32xf32>
    %cst_16 = arith.constant 0.000000e+00 : f32
    %17 = vector.broadcast %cst_16 : f32 to vector<8x32xf32>
    %18 = arith.maximumf %16, %17 : vector<8x32xf32>
    %c0_17 = arith.constant 0 : index
    %c0_18 = arith.constant 0 : index
    %19 = vector.load %arg8[%c0_17, %c0_18] : memref<32x128xf32, #tpu.memory_space<vmem>>, vector<32x128xf32>
    %cst_19 = arith.constant dense<0.000000e+00> : vector<8x128xf32>
    %20 = tpu.matmul %18, %19, %cst_19 {dimension_numbers = #tpu.dot_dimension_numbers<[1], [0], [0], [1], [0, 0, 1, 1], [], []>} : vector<8x32xf32>, vector<32x128xf32>, vector<8x128xf32> -> vector<8x128xf32>
    %c0_20 = arith.constant 0 : index
    %c0_21 = arith.constant 0 : index
    %21 = vector.load %arg9[%c0_20, %c0_21] : memref<1x128xf32, #tpu.memory_space<vmem>>, vector<1x128xf32>
    %22 = vector.broadcast %21 : vector<1x128xf32> to vector<8x128xf32>
    %23 = arith.addf %20, %22 : vector<8x128xf32>
    %c0_22 = arith.constant 0 : index
    %c0_23 = arith.constant 0 : index
    %24 = vector.load %arg10[%c0_22, %c0_23] : memref<8x128xf32, #tpu.memory_space<vmem>>, vector<8x128xf32>
    tpu.vector_store %arg10[%c0_22, %c0_23], %23 {strides = array<i32>} : memref<8x128xf32, #tpu.memory_space<vmem>>, vector<8x128xf32>,
    return
  }
  func.func @transform_0(%arg0: i32) -> (i32, i32) {
    %c0_i32 = arith.constant 0 : i32
    %c0_i32_0 = arith.constant 0 : i32
    return %arg0, %c0_i32 : i32, i32
  }
  func.func @transform_1(%arg0: i32) -> (i32, i32) {
    %c0_i32 = arith.constant 0 : i32
    %c0_i32_0 = arith.constant 0 : i32
    return %arg0, %c0_i32 : i32, i32
  }
  func.func @transform_2(%arg0: i32) -> (i32, i32) {
    %c0_i32 = arith.constant 0 : i32
    %c0_i32_0 = arith.constant 0 : i32
    %c0_i32_1 = arith.constant 0 : i32
    return %c0_i32, %c0_i32_0 : i32, i32
  }
  func.func @transform_3(%arg0: i32) -> (i32, i32) {
    %c0_i32 = arith.constant 0 : i32
    %c0_i32_0 = arith.constant 0 : i32
    %c0_i32_1 = arith.constant 0 : i32
    return %c0_i32, %c0_i32_0 : i32, i32
  }
  func.func @transform_4(%arg0: i32) -> (i32, i32) {
    %c0_i32 = arith.constant 0 : i32
    %c0_i32_0 = arith.constant 0 : i32
    %c0_i32_1 = arith.constant 0 : i32
    return %c0_i32, %c0_i32_0 : i32, i32
  }
  func.func @transform_5(%arg0: i32) -> (i32, i32) {
    %c0_i32 = arith.constant 0 : i32
    %c0_i32_0 = arith.constant 0 : i32
    %c0_i32_1 = arith.constant 0 : i32
    return %c0_i32, %c0_i32_0 : i32, i32
  }
  func.func @transform_6(%arg0: i32) -> (i32, i32) {
    %c0_i32 = arith.constant 0 : i32
    %c0_i32_0 = arith.constant 0 : i32
    %c0_i32_1 = arith.constant 0 : i32
    return %c0_i32, %c0_i32_0 : i32, i32
  }
  func.func @transform_7(%arg0: i32) -> (i32, i32) {
    %c0_i32 = arith.constant 0 : i32
    %c0_i32_0 = arith.constant 0 : i32
    %c0_i32_1 = arith.constant 0 : i32
    return %c0_i32, %c0_i32_0 : i32, i32
  }
  func.func @transform_8(%arg0: i32) -> (i32, i32) {
    %c0_i32 = arith.constant 0 : i32
    %c0_i32_0 = arith.constant 0 : i32
    %c0_i32_1 = arith.constant 0 : i32
    return %c0_i32, %c0_i32_0 : i32, i32
  }
  func.func @transform_9(%arg0: i32) -> (i32, i32) {
    %c0_i32 = arith.constant 0 : i32
    %c0_i32_0 = arith.constant 0 : i32
    return %arg0, %c0_i32 : i32, i32
  }
}

</mosaic_0001>

<bundles_post_ra>
// kernel: tpu_custom_call.1
= control target key start
LH: loop header
LB: loop body
LE: loop exit
PB: predicated region body
PF: predicated region fallthrough
CT: control target
= control target key end

     0   :  { %14 = vsyncpa [#allocation3], 0  ;;  %s788_s0 = inlined_call_operand.hbm [shape: f32[8,17], index: 0, kind: input, shape index: {}]   ;;  %s789_s1 = inlined_call_operand.hbm [shape: f32[8,6], index: 1, kind: input, shape index: {}]   ;;  %s790_s2 = inlined_call_operand.hbm [shape: f32[17,32], index: 2, kind: input, shape index: {}]   ;;  %s791_s3 = inlined_call_operand.hbm [shape: f32[6,32], index: 3, kind: input, shape index: {}]   ;;  %s792_s4 = inlined_call_operand.vmem [shape: f32[1,32], index: 4, kind: input, shape index: {}]   ;;  %s793_s5 = inlined_call_operand.hbm [shape: f32[32,32], index: 5, kind: input, shape index: {}]   ;;  %s794_s6 = inlined_call_operand.vmem [shape: f32[1,32], index: 6, kind: input, shape index: {}]   ;;  %s795_s7 = inlined_call_operand.hbm [shape: f32[32,128], index: 7, kind: input, shape index: {}]   ;;  %s796_s8 = inlined_call_operand.vmem [shape: f32[1,128], index: 8, kind: input, shape index: {}]   ;;  %s797_s9 = inlined_call_operand.hbm [shape: f32[8,128], index: 9, kind: output, shape index: {}]  }
   0x1   :  { %15 = vsyncpa [#allocation6], 0 }
   0x2   :  { %16 = vsyncpa [#allocation9], 0 }
   0x3   :  { %17 = vsyncpa [#allocation12], 0 }
   0x4   :  { %18 = vsyncpa [#allocation4], 0  ;;  %s691_s30 = smov [#allocation5]   ;;  %s692_s11 = smov [#allocation8]  }
   0x5   :  { %s35_s10 = sshll.u32 %s691_s30, 4  ;;  %s57_s12 = sshll.u32 %s692_s11, 4  ;;  %s36_s10 = int_to_ptr.vmem [resolvable:$true] %s35_s10  ;;  %s58_s12 = int_to_ptr.vmem [resolvable:$true] %s57_s12 }
   0x6   :  { %s549_s13 = scalar_lea.vmem %s36_s10, 128  ;;  %p554_p1 = scmp.lt.s32.totalorder %s36_s10, %s36_s10 }
   0x7   :  { %p550_p0 = scmp.ne.s32.totalorder %s36_s10, %s549_s13  ;;  %p555_p2 = scmp.lt.s32.totalorder %s549_s13, %s549_s13 }
   0x9   :  { %p556_p3 = por %p555_p2, %p554_p1 }
   0xb   :  { %p557_p4 = pnand %p556_p3, %p550_p0 }
   0xd   :  { %560 = shalt.err (!%p557_p4)
}
   0xe   :  { %38 = dma.hbm_to_vmem [thread:$0]  %s789_s1, 128, %s36_s10, [#allocation6]  }
   0xf   :  { %s569_s16 = scalar_lea.vmem %s58_s12, 128  ;;  %p574_p6 = scmp.lt.s32.totalorder %s58_s12, %s58_s12 }
  0x10   :  { %p570_p5 = scmp.ne.s32.totalorder %s58_s12, %s569_s16  ;;  %p575_p7 = scmp.lt.s32.totalorder %s569_s16, %s569_s16 }
  0x12   :  { %p576_p8 = por %p575_p7, %p574_p6 }
  0x14   :  { %p577_p9 = pnand %p576_p8, %p570_p5 }
  0x16   :  { %580 = shalt.err (!%p577_p9)
}
  0x17   :  { %60 = dma.hbm_to_vmem [thread:$0]  %s791_s3, 128, %s58_s12, [#allocation9]  }
  0x18   :  { %s693_s19 = smov [#allocation2]   ;;  %s694_s21 = smov [#allocation7]  }
  0x19   :  { %s25_s20 = sshll.u32 %s693_s19, 4  ;;  %s44_s22 = sshll.u32 %s694_s21, 4  ;;  %s26_s20 = int_to_ptr.vmem [resolvable:$true] %s25_s20  ;;  %s45_s22 = int_to_ptr.vmem [resolvable:$true] %s44_s22 }
  0x1a   :  { %s589_s23 = scalar_lea.vmem %s26_s20, 128  ;;  %p594_p11 = scmp.lt.s32.totalorder %s26_s20, %s26_s20 }
  0x1b   :  { %p590_p10 = scmp.ne.s32.totalorder %s26_s20, %s589_s23  ;;  %p595_p12 = scmp.lt.s32.totalorder %s589_s23, %s589_s23 }
  0x1d   :  { %p596_p13 = por %p595_p12, %p594_p11 }
  0x1f   :  { %p597_p0 = pnand %p596_p13, %p590_p10 }
  0x21   :  { %600 = shalt.err (!%p597_p0)
}
  0x22   :  { %28 = dma.hbm_to_vmem [thread:$0]  %s788_s0, 128, %s26_s20, [#allocation3]  }
  0x23   :  { %s609_s25 = scalar_lea.vmem %s45_s22, 384  ;;  %p614_p2 = scmp.lt.s32.totalorder %s45_s22, %s45_s22 }
  0x24   :  { %p610_p1 = scmp.ne.s32.totalorder %s45_s22, %s609_s25  ;;  %p615_p3 = scmp.lt.s32.totalorder %s609_s25, %s609_s25 }
  0x26   :  { %p616_p4 = por %p615_p3, %p614_p2 }
  0x28   :  { %p617_p5 = pnand %p616_p4, %p610_p1 }
  0x2a   :  { %620 = shalt.err (!%p617_p5)
}
  0x2b   :  { %s695_s3 = smov 128   ;;  %s696_s26 = smov 8  }
  0x2c   :  { %50 = dma.hbm_to_vmem [thread:$0]  %s790_s2, 384, %s45_s22, [#allocation6], %s695_s3, %s695_s3, %s696_s26  }
  0x2d   :  { %s697_s29 = smov [#allocation10]   ;;  %s698_s10 = smov [#allocation11]  }
  0x2e   :  { %s68_s30 = sshll.u32 %s697_s29, 4  ;;  %s82_s11 = sshll.u32 %s698_s10, 4  ;;  %s69_s30 = int_to_ptr.vmem [resolvable:$true] %s68_s30  ;;  %s83_s11 = int_to_ptr.vmem [resolvable:$true] %s82_s11 }
  0x2f   :  { %s629_s0 = scalar_lea.vmem %s69_s30, 512  ;;  %p634_p7 = scmp.lt.s32.totalorder %s69_s30, %s69_s30 }
  0x30   :  { %p630_p6 = scmp.ne.s32.totalorder %s69_s30, %s629_s0  ;;  %p635_p8 = scmp.lt.s32.totalorder %s629_s0, %s629_s0 }
  0x32   :  { %p636_p9 = por %p635_p8, %p634_p7 }
  0x34   :  { %p637_p10 = pnand %p636_p9, %p630_p6 }
  0x36   :  { %640 = shalt.err (!%p637_p10)
}
  0x37   :  { %74 = dma.hbm_to_vmem [thread:$0]  %s793_s5, 512, %s69_s30, [#allocation9], %s695_s3, %s695_s3, %s696_s26  }
  0x38   :  { %s649_s14 = scalar_lea.vmem %s83_s11, 512  ;;  %p654_p12 = scmp.lt.s32.totalorder %s83_s11, %s83_s11 }
  0x39   :  { %p650_p11 = scmp.ne.s32.totalorder %s83_s11, %s649_s14  ;;  %p655_p13 = scmp.lt.s32.totalorder %s649_s14, %s649_s14 }
  0x3b   :  { %p656_p0 = por %p655_p13, %p654_p12 }
  0x3d   :  { %p657_p1 = pnand %p656_p0, %p650_p11 }
  0x3f   :  { %660 = shalt.err (!%p657_p1)
}
  0x40   :  { %88 = dma.hbm_to_vmem [thread:$0]  %s795_s7, 512, %s83_s11, [#allocation12], %s695_s3, %s695_s3, %s696_s26  }
  0x41   :  { %681 = dma.done.wait [#allocation3], 128  }
  0x42   :  { %682 = vsyncadd [#allocation3], 4294967168 }
  0x43   :  { %683 = dma.done.wait [#allocation6], 512  }
  0x44   :  { %684 = vsyncadd [#allocation6], 4294966784 }
  0x45   :  { %685 = dma.done.wait [#allocation9], 640  }
  0x46   :  { %686 = vsyncadd [#allocation9], 4294966656 }
  0x47   :  { %687 = dma.done.wait [#allocation12], 512  }
  0x48   :  { %688 = vsyncadd [#allocation12], 4294966784  ;;  %v699_v0 = vmov 0.0   ;;  %vm700_vm0 = vmmov 0   ;;  %vm197_vm1 = vcmask 1040384   ;;  %vm119_vm2 = vcmask 1045504  }
  0x49   :  { %499 = vmatprep.subr.mxu1 %v699_v0  ;;  %494 = vmatprep.subr.mxu0 %v699_v0  ;;  %vm115_vm3 = vcmask 48128   ;;  %v112_v1 = vld [vmem:[#allocation7 + $0x10] sm:$0x1]  ;;  %v114_v2 = vld [vmem:[#allocation8] sm:$0x3f]  ;;  %v111_v3 = vld [vmem:[#allocation7 + $0x8] sm:$0xff] }
  0x4a   :  { %496 = vmatprep.mubr.msk.f32.mxu0 %vm700_vm0, %v699_v0  ;;  %505 = vmatprep.mubr.msk.f32.mxu1 %vm700_vm0, %v699_v0  ;;  %v113_v4 = vld [vmem:[#allocation5] sm:$0xff]  ;;  %v110_v5 = vld [vmem:[#allocation7] sm:$0xff]  ;;  %v109_v6 = vld [vmem:[#allocation2] sm:$0xff]  ;;  %vm193_vm4 = vcmask 138240   ;;  %vm291_vm5 = vcmask 261120   ;;  %s701_s19 = smov [#allocation13]  }
  0x4b   :  { %500 = vmatpush3.msk.msra.mxu1 %vm197_vm1, %v112_v1  ;;  %495 = vmatpush3.msk.msra.mxu0 %vm119_vm2, %v114_v2  ;;  %v283_v7 = vld [vmem:[#allocation10 + $0x18] sm:$0xff]  ;;  %v282_v8 = vld [vmem:[#allocation10 + $0x10] sm:$0xff]  ;;  %v281_v9 = vld [vmem:[#allocation10 + $0x8] sm:$0xff]  ;;  %s457_s20 = sshll.u32 %s701_s19, 4  ;;  %s458_s20 = int_to_ptr.vmem [resolvable:$true] %s457_s20 }
  0x4c   :  { %501 = vmatprep.subr.mxu1 %v699_v0  ;;  %497 = vmatmul.mubr.msk.f32.vlgmr.msra.gmra.mxu0 %vm115_vm3, %v113_v4  ;;  %v280_v10 = vld [vmem:[#allocation10] sm:$0xff]  ;;  %v369_v11 = vld [vmem:[#allocation11 + $0x18] sm:$0xff]  ;;  %v473_v15 = vld [vmem:[%s792_s4] ss:$0 sm:$0xff]  ;;  %s661_s21 = scalar_lea.vmem %s458_s20, 128  ;;  %p666_p3 = scmp.lt.s32.totalorder %s458_s20, %s458_s20 }
  0x4d   :  { %502 = vmatpush3.msra.mxu1 %v111_v3  ;;  %508 = vmatprep.subr.mxu0 %v699_v0  ;;  %v368_v20 = vld [vmem:[#allocation11 + $0x10] sm:$0xff]  ;;  %v367_v21 = vld [vmem:[#allocation11 + $0x8] sm:$0xff]  ;;  %v366_v22 = vld [vmem:[#allocation11] sm:$0xff]  ;;  %p662_p2 = scmp.ne.s32.totalorder %s458_s20, %s661_s21  ;;  %p667_p4 = scmp.lt.s32.totalorder %s661_s21, %s661_s21 }
  0x4e   :  { %503 = vmatprep.subr.mxu1 %v699_v0  ;;  %516 = vmatprep.mubr.msk.f32.mxu0 %vm700_vm0, %v699_v0  ;;  %v474_v23 = vld [vmem:[%s794_s6] ss:$0 sm:$0xff] }
  0x4f   :  { %504 = vmatpush3.msra.mxu1 %v110_v5  ;;  %509 = vmatpush3.msra.mxu0 %v283_v7  ;;  %v476_v28 = vld [vmem:[%s796_s8] ss:$0 sm:$0xff]  ;;  %p668_p5 = por %p667_p4, %p666_p3 }
  0x50   :  { %506 = vmatmul.mubr.msk.f32.vlgmr.msra.gmra.mxu1 %vm193_vm4, %v109_v6  ;;  %519 = vmatprep.subr.mxu1 %v699_v0 }
  0x51   :  { %527 = vmatprep.mubr.msk.f32.mxu1 %vm700_vm0, %v699_v0  ;;  %510 = vmatprep.subr.mxu0 %v699_v0  ;;  %p669_p6 = pnand %p668_p5, %p662_p2 }
  0x52   :  { %511 = vmatpush3.msra.mxu0 %v282_v8  ;;  %520 = vmatpush3.msra.mxu1 %v369_v11 }
  0x53   :  { %512 = vmatprep.subr.mxu0 %v699_v0  ;;  %521 = vmatprep.subr.mxu1 %v699_v0 }
  0x54   :  { %513 = vmatpush3.msra.mxu0 %v281_v9  ;;  %522 = vmatpush3.msra.mxu1 %v368_v20 }
  0x55   :  { %514 = vmatprep.subr.mxu0 %v699_v0  ;;  %523 = vmatprep.subr.mxu1 %v699_v0 }
  0x56   :  { %515 = vmatpush3.msra.mxu0 %v280_v10  ;;  %524 = vmatpush3.msra.mxu1 %v367_v21 }
  0x57   :  { %525 = vmatprep.subr.mxu1 %v699_v0 }
  0x58   :  { %526 = vmatpush3.msra.mxu1 %v366_v22 }
 0x10c   :  { %v189_v12 = vpop.f32.mrf.mxu0 }
 0x10e   :  { %v498_v13 = vpop.f32.mrf.mxu0 }
 0x110   :  { %v267_v14 = vpop.f32.mrf.mxu1 }
 0x111   :  { %v268_v16 = vadd.f32 %v267_v14, %v189_v12 }
 0x112   :  { %v507_v17 = vpop.f32.mrf.mxu1 }
 0x113   :  { %v278_v18 = vadd.f32 %v473_v15, %v268_v16 }
 0x115   :  { %v279_v19 = vmax.f32 %v278_v18, 0.0 }
 0x117   :  { %517 = vmatmul.mubr.msk.f32.vlgmr.msra.gmra.mxu0 %vm291_vm5, %v279_v19 }
 0x1d7   :  { %v361_v24 = vpop.f32.mrf.mxu0 }
 0x1d8   :  { %v362_v25 = vadd.f32 %v474_v23, %v361_v24 }
 0x1d9   :  { %v518_v26 = vpop.f32.mrf.mxu0 }
 0x1da   :  { %v365_v27 = vmax.f32 %v362_v25, 0.0 }
 0x1dc   :  { %528 = vmatmul.mubr.msk.f32.vlgmr.msra.gmra.mxu1 %vm291_vm5, %v365_v27 }
 0x29c   :  { %v446_v29 = vpop.f32.mrf.mxu1 }
 0x29d   :  { %v447_v30 = vadd.f32 %v476_v28, %v446_v29 }
 0x29e   :  { %v529_v31 = vpop.f32.mrf.mxu1 }
 0x29f   :  { %450 = vst [vmem:[#allocation13] sm:$0xff] %v447_v30 }
 0x2a0   :  { %672 = shalt.err (!%p669_p6)
}
 0x2a1   :  { %460 = dma.vmem_to_hbm [thread:$0]  %s458_s20, 128, %s797_s9, [#allocation4]  }
 0x2a2   :  { %689 = dma.done.wait [#allocation4], 128  }
 0x2a3   :  { %690 = vsyncadd [#allocation4], 4294967168 }
 0x2a4   :  { %464 = vsyncpa [#allocation3], 1 }
 0x2a5   :  { %465 = vsyncpa [#allocation6], 1 }
 0x2a6   :  { %466 = vsyncpa [#allocation9], 1 }
 0x2a7   :  { %467 = vsyncpa [#allocation12], 1 }
 0x2a8   :  { %468 = vsyncpa [#allocation4], 1 }

</bundles_post_ra>
